<compile_context>
chip_gen: v5e
topology: v5e:2x2
jax: 0.10.0
libtpu: 0.0.40
codegen_flags: <defaults>
</compile_context>

<pallas_src>
import functools

import jax
import jax.numpy as jnp
from jax.experimental import pallas as pl
from jax.experimental.pallas import tpu as pltpu


# ------------------------------ Pallas kernel ------------------------------ #

def _bottleneck_kernel(*refs, H, W, downsample):
    """Fused bottleneck block for one batch element (spatial flattened to rows)."""
    if downsample:
        (x_ref, w1_ref, b1_ref, w2_ref, b2_ref, w3_ref, b3_ref,
         ws_ref, bs_ref, o_ref, pad_ref) = refs
    else:
        (x_ref, w1_ref, b1_ref, w2_ref, b2_ref, w3_ref, b3_ref,
         o_ref, pad_ref) = refs
        ws_ref = bs_ref = None

    HW = H * W
    cdt = w1_ref.dtype                    # MXU input dtype (bf16 or f32)
    cmid = w1_ref.shape[-1]

    x2d = x_ref[...]                      # (HW, Cin)

    # ---- conv1 (1x1) + folded BN + ReLU -----------------------------------
    y1 = jnp.dot(x2d, w1_ref[...], preferred_element_type=jnp.float32)
    y1 = jnp.maximum(y1 + b1_ref[...], 0.0)                      # (HW, cmid) f32

    # ---- conv2 (3x3, pad=1) as 9 shifted-row matmuls -----------------------
    # Scratch holds y1 padded by 2 zero rows of width W on each side (in H).
    # Only the halo rows need zeroing; the interior is fully overwritten.
    halo = jnp.zeros((2 * W, cmid), pad_ref.dtype)
    pad_ref[pl.ds(0, 2 * W), :] = halo                 # top halo
    pad_ref[pl.ds(2 * W + HW, 2 * W), :] = halo        # bottom halo
    pad_ref[pl.ds(2 * W, HW), :] = y1                  # interior

    col = jax.lax.broadcasted_iota(jnp.int32, (HW, cmid), 0) % W  # w-coordinate
    left_edge = col == 0                               # hoisted wrap masks
    right_edge = col == W - 1

    acc = jnp.zeros((HW, cmid), jnp.float32) + b2_ref[...]
    for t in range(9):                    # unrolled at trace time
        ky, kx = t // 3, t % 3
        base = (ky + 1) * W + (kx - 1)    # flat row offset of tap (ky-1, kx-1)
        patch = pad_ref[pl.ds(base, HW), :]
        if kx == 0:                       # mask width wrap-around rows
            patch = jnp.where(left_edge, 0.0, patch)
        elif kx == 2:
            patch = jnp.where(right_edge, 0.0, patch)
        acc = acc + jnp.dot(patch.astype(cdt), w2_ref[t],
                            preferred_element_type=jnp.float32)
    y2 = jnp.maximum(acc, 0.0).astype(cdt)                       # (HW, cmid)

    # ---- conv3 (1x1) + folded BN + ReLU (this module ReLUs before the add) --
    y3 = jnp.dot(y2, w3_ref[...], preferred_element_type=jnp.float32)
    y3 = jnp.maximum(y3 + b3_ref[...], 0.0)                      # (HW, Cout) f32

    # ---- shortcut + final ReLU ----------------------------------------------
    if downsample:
        s = jnp.dot(x2d, ws_ref[...], preferred_element_type=jnp.float32)
        s = s + bs_ref[...]
    else:
        s = x2d.astype(jnp.float32)       # identity (Cin == Cout)
    o_ref[...] = jnp.maximum(y3 + s, 0.0).astype(o_ref.dtype)


# ------------------------------ host wrapper ------------------------------- #

def bottleneck_forward(x_nchw, p, downsample=False, compute_dtype=jnp.bfloat16):
    """Forward pass of BottleneckBlock.  x_nchw: (N, Cin, H, W) float32."""
    N = x_nchw.shape[0]
    x = jnp.transpose(x_nchw, (0, 2, 3, 1))            # NCHW -> NHWC
    if downsample:
        # conv1 and the shortcut conv are both 1x1 stride-2: same subsampling.
        x = x[:, ::2, ::2, :]
    H1, W1, Cin = x.shape[1], x.shape[2], x.shape[3]
    HW = H1 * W1
    x2 = x.reshape(N, HW, Cin).astype(compute_dtype)

    cmid = p["w1"].shape[1]
    Cout = p["w3"].shape[1]
    if not downsample:
        assert Cin == Cout, "identity shortcut requires Cin == Cout"

    w1 = p["w1"].astype(compute_dtype)                 # (Cin, cmid)  scale-folded
    w2 = p["w2"].astype(compute_dtype)                 # (9, cmid, cmid)
    w3 = p["w3"].astype(compute_dtype)                 # (cmid, Cout)
    b1 = p["b1"].reshape(1, -1).astype(jnp.float32)
    b2 = p["b2"].reshape(1, -1).astype(jnp.float32)
    b3 = p["b3"].reshape(1, -1).astype(jnp.float32)

    args = [x2, w1, b1, w2, b2, w3, b3]
    in_specs = [
        pl.BlockSpec((None, HW, Cin), lambda n: (n, 0, 0)),     # per-image rows
        pl.BlockSpec((Cin, cmid), lambda n: (0, 0)),            # resident weights
        pl.BlockSpec((1, cmid), lambda n: (0, 0)),
        pl.BlockSpec((9, cmid, cmid), lambda n: (0, 0, 0)),
        pl.BlockSpec((1, cmid), lambda n: (0, 0)),
        pl.BlockSpec((cmid, Cout), lambda n: (0, 0)),
        pl.BlockSpec((1, Cout), lambda n: (0, 0)),
    ]
    if downsample:
        args += [p["ws"].astype(compute_dtype),
                 p["bs"].reshape(1, -1).astype(jnp.float32)]
        in_specs += [pl.BlockSpec((Cin, Cout), lambda n: (0, 0)),
                     pl.BlockSpec((1, Cout), lambda n: (0, 0))]

    flops = 2 * N * HW * (Cin * cmid + 9 * cmid * cmid + cmid * Cout
                          + (Cin * Cout if downsample else 0))
    bytes_accessed = int(sum(int(a.size) * a.dtype.itemsize for a in args)
                         + N * HW * Cout * 4)

    kernel = functools.partial(_bottleneck_kernel, H=H1, W=W1,
                               downsample=downsample)
    out = pl.pallas_call(
        kernel,
        out_shape=jax.ShapeDtypeStruct((N, HW, Cout), jnp.float32),
        grid=(N,),
        in_specs=in_specs,
        out_specs=pl.BlockSpec((None, HW, Cout), lambda n: (n, 0, 0)),
        scratch_shapes=[pltpu.VMEM(((H1 + 4) * W1, cmid), jnp.float32)],
        compiler_params=pltpu.CompilerParams(
            dimension_semantics=("parallel",)),
        cost_estimate=pl.CostEstimate(flops=int(flops), transcendentals=0,
                                      bytes_accessed=bytes_accessed),
    )(*args)

    out = out.reshape(N, H1, W1, Cout)
    return jnp.transpose(out, (0, 3, 1, 2))            # NHWC -> NCHW


# ----------------------- deterministic parameter init ---------------------- #

def init_params(key, cin, cout, downsample):
    cmid = cout // 4
    keys = iter(jax.random.split(key, 40))

    def conv(co, ci, k):
        w = jax.random.normal(next(keys), (co, ci, k, k), jnp.float32) / (ci * k * k) ** 0.5
        b = jax.random.normal(next(keys), (co,), jnp.float32) * 0.1
        return w, b

    def bn(c):
        g = jax.random.uniform(next(keys), (c,), jnp.float32, 0.5, 1.5)
        be = jax.random.normal(next(keys), (c,), jnp.float32) * 0.1
        m = jax.random.normal(next(keys), (c,), jnp.float32) * 0.1
        v = jax.random.uniform(next(keys), (c,), jnp.float32, 0.5, 1.5)
        return g, be, m, v

    raw = {
        "conv1": conv(cmid, cin, 1), "bn1": bn(cmid),
        "conv2": conv(cmid, cmid, 3), "bn2": bn(cmid),
        "conv3": conv(cout, cmid, 1), "bn3": bn(cout),
    }
    if downsample:
        raw["convs"] = conv(cout, cin, 1)
        raw["bns"] = bn(cout)
    return raw


def fold_params(raw, downsample, eps=1e-5):
    """Fold eval-mode BN (scale into weights, rest into a bias) and reorder for matmul."""
    def fold(wb, bnp):
        w, b = wb                          # w: OIHW, b: (O,)
        g, be, m, v = bnp
        s = g / jnp.sqrt(v + eps)
        return w * s[:, None, None, None], be + (b - m) * s

    w1, b1 = fold(raw["conv1"], raw["bn1"])
    w2, b2 = fold(raw["conv2"], raw["bn2"])
    w3, b3 = fold(raw["conv3"], raw["bn3"])
    cmid = w2.shape[0]
    p = {
        "w1": jnp.transpose(w1[:, :, 0, 0], (1, 0)),                         # (Cin, cmid)
        "b1": b1,
        "w2": jnp.transpose(w2, (2, 3, 1, 0)).reshape(9, cmid, cmid),        # [ky*3+kx, in, out]
        "b2": b2,
        "w3": jnp.transpose(w3[:, :, 0, 0], (1, 0)),                         # (cmid, Cout)
        "b3": b3,
    }
    if downsample:
        ws, bs = fold(raw["convs"], raw["bns"])
        p["ws"] = jnp.transpose(ws[:, :, 0, 0], (1, 0))                      # (Cin, Cout)
        p["bs"] = bs
    return p


# --------------------------- pure-JAX reference ---------------------------- #

def reference_forward(x, raw, downsample, eps=1e-5):
    def conv(x, wb, stride, pad):
        w, b = wb
        y = jax.lax.conv_general_dilated(
            x, w, (stride, stride), [(pad, pad), (pad, pad)],
            dimension_numbers=("NCHW", "OIHW", "NCHW"))
        return y + b[None, :, None, None]

    def bn(x, pbn):
        g, be, m, v = pbn
        inv = g / jnp.sqrt(v + eps)
        return x * inv[None, :, None, None] + (be - m * inv)[None, :, None, None]

    stride = 2 if downsample else 1
    out = jax.nn.relu(bn(conv(x, raw["conv1"], stride, 0), raw["bn1"]))
    out = jax.nn.relu(bn(conv(out, raw["conv2"], 1, 1), raw["bn2"]))
    out = jax.nn.relu(bn(conv(out, raw["conv3"], 1, 0), raw["bn3"]))
    sc = bn(conv(x, raw["convs"], 2, 0), raw["bns"]) if downsample else x
    return jax.nn.relu(out + sc)


# ----------------------------------- main ----------------------------------- #

if __name__ == "__main__":
    key = jax.random.PRNGKey(0)
    k1, k2, k3, k4 = jax.random.split(key, 4)

    # Config A: identity shortcut (Cin == Cout == 128, lane-dense), no downsample.
    N, C, H, W = 2, 128, 8, 8
    x = jax.random.normal(k1, (N, C, H, W), jnp.float32)
    raw = init_params(k2, C, C, downsample=False)
    p = fold_params(raw, downsample=False)
    ref = reference_forward(x, raw, downsample=False)

    # strict correctness check (f32 compute path)
    out32 = jax.block_until_ready(bottleneck_forward(x, p, False, jnp.float32))
    assert out32.shape == ref.shape, (out32.shape, ref.shape)
    err32 = float(jnp.max(jnp.abs(out32 - ref)))
    assert err32 < 2e-3, f"f32 path max abs err {err32}"

    # performance path (bf16 MXU inputs, f32 accumulation) -- loose tolerance
    out16 = jax.block_until_ready(bottleneck_forward(x, p, False, jnp.bfloat16))
    scale = float(jnp.max(jnp.abs(ref))) + 1e-6
    rel16 = float(jnp.max(jnp.abs(out16 - ref))) / scale
    assert rel16 < 5e-2, f"bf16 path rel err {rel16}"

    # Config B: downsample (stride-2 + projection shortcut), Cin != Cout.
    N2, C2i, C2o, H2, W2 = 2, 64, 128, 8, 8
    x2 = jax.random.normal(k3, (N2, C2i, H2, W2), jnp.float32)
    raw2 = init_params(k4, C2i, C2o, downsample=True)
    p2 = fold_params(raw2, downsample=True)
    ref2 = reference_forward(x2, raw2, downsample=True)
    out2 = jax.block_until_ready(bottleneck_forward(x2, p2, True, jnp.float32))
    assert out2.shape == ref2.shape, (out2.shape, ref2.shape)
    err2 = float(jnp.max(jnp.abs(out2 - ref2)))
    assert err2 < 2e-3, f"downsample f32 max abs err {err2}"

    print("KERNEL_OK")
</pallas_src>

<mosaic_0001>
module attributes {stable_mosaic.version = 11 : i64} {
  func.func @_bottleneck_kernel(%arg0: i32, %arg1: memref<1x64x128xf32, #tpu.memory_space<vmem>>, %arg2: memref<128x32xf32, #tpu.memory_space<vmem>>, %arg3: memref<1x32xf32, #tpu.memory_space<vmem>>, %arg4: memref<9x32x32xf32, #tpu.memory_space<vmem>>, %arg5: memref<1x32xf32, #tpu.memory_space<vmem>>, %arg6: memref<32x128xf32, #tpu.memory_space<vmem>>, %arg7: memref<1x128xf32, #tpu.memory_space<vmem>>, %arg8: memref<1x64x128xf32, #tpu.memory_space<vmem>>, %arg9: memref<96x32xf32, #tpu.memory_space<vmem>>) attributes {dimension_semantics = [#tpu.dimension_semantics<parallel>], iteration_bounds = array<i64: 2>, scalar_prefetch = 0 : i64, scratch_operands = 1 : i64, tpu.core_type = #tpu.core_type<tc>, window_params = [{transform_indices = @transform_0, window_bounds = array<i64: 1, 64, 128>}, {pipeline_mode = #tpu.pipeline_mode<synchronous>, transform_indices = @transform_1, window_bounds = array<i64: 128, 32>}, {pipeline_mode = #tpu.pipeline_mode<synchronous>, transform_indices = @transform_2, window_bounds = array<i64: 1, 32>}, {pipeline_mode = #tpu.pipeline_mode<synchronous>, transform_indices = @transform_3, window_bounds = array<i64: 9, 32, 32>}, {pipeline_mode = #tpu.pipeline_mode<synchronous>, transform_indices = @transform_4, window_bounds = array<i64: 1, 32>}, {pipeline_mode = #tpu.pipeline_mode<synchronous>, transform_indices = @transform_5, window_bounds = array<i64: 32, 128>}, {pipeline_mode = #tpu.pipeline_mode<synchronous>, transform_indices = @transform_6, window_bounds = array<i64: 1, 128>}, {transform_indices = @transform_7, window_bounds = array<i64: 1, 64, 128>}]} {
    %c0 = arith.constant 0 : index
    %c0_0 = arith.constant 0 : index
    %c0_1 = arith.constant 0 : index
    %0 = vector.load %arg1[%c0, %c0_0, %c0_1] : memref<1x64x128xf32, #tpu.memory_space<vmem>>, vector<1x64x128xf32>
    %1 = vector.shape_cast %0 : vector<1x64x128xf32> to vector<64x128xf32>
    %c0_2 = arith.constant 0 : index
    %c0_3 = arith.constant 0 : index
    %2 = vector.load %arg2[%c0_2, %c0_3] : memref<128x32xf32, #tpu.memory_space<vmem>>, vector<128x32xf32>
    %cst = arith.constant dense<0.000000e+00> : vector<64x32xf32>
    %3 = tpu.matmul %1, %2, %cst {dimension_numbers = #tpu.dot_dimension_numbers<[1], [0], [0], [1], [0, 0, 1, 1], [], []>} : vector<64x128xf32>, vector<128x32xf32>, vector<64x32xf32> -> vector<64x32xf32>
    %c0_4 = arith.constant 0 : index
    %c0_5 = arith.constant 0 : index
    %4 = vector.load %arg3[%c0_4, %c0_5] : memref<1x32xf32, #tpu.memory_space<vmem>>, vector<1x32xf32>
    %5 = vector.broadcast %4 : vector<1x32xf32> to vector<64x32xf32>
    %6 = arith.addf %3, %5 : vector<64x32xf32>
    %cst_6 = arith.constant 0.000000e+00 : f32
    %7 = vector.broadcast %cst_6 : f32 to vector<64x32xf32>
    %8 = arith.maximumf %6, %7 : vector<64x32xf32>
    %cst_7 = arith.constant 0.000000e+00 : f32
    %9 = vector.broadcast %cst_7 : f32 to vector<16x32xf32>
    %c0_8 = arith.constant 0 : index
    %c0_9 = arith.constant 0 : index
    %10 = vector.load %arg9[%c0_8, %c0_9] : memref<96x32xf32, #tpu.memory_space<vmem>>, vector<16x32xf32>
    tpu.vector_store %arg9[%c0_8, %c0_9], %9 {strides = array<i32>} : memref<96x32xf32, #tpu.memory_space<vmem>>, vector<16x32xf32>,
    %c80 = arith.constant 80 : index
    %c0_10 = arith.constant 0 : index
    %11 = vector.load %arg9[%c80, %c0_10] : memref<96x32xf32, #tpu.memory_space<vmem>>, vector<16x32xf32>
    tpu.vector_store %arg9[%c80, %c0_10], %9 {strides = array<i32>} : memref<96x32xf32, #tpu.memory_space<vmem>>, vector<16x32xf32>,
    %c16 = arith.constant 16 : index
    %c0_11 = arith.constant 0 : index
    %12 = vector.load %arg9[%c16, %c0_11] : memref<96x32xf32, #tpu.memory_space<vmem>>, vector<64x32xf32>
    tpu.vector_store %arg9[%c16, %c0_11], %8 {strides = array<i32>} : memref<96x32xf32, #tpu.memory_space<vmem>>, vector<64x32xf32>,
    %13 = tpu.iota {dimensions = array<i32: 0>} : vector<64x32xi32>
    %c8_i32 = arith.constant 8 : i32
    %c0_i32 = arith.constant 0 : i32
    %14 = arith.cmpi eq, %c8_i32, %c0_i32 : i32
    %c1_i32 = arith.constant 1 : i32
    %15 = arith.select %14, %c1_i32, %c8_i32 : i32
    %16 = vector.broadcast %15 : i32 to vector<64x32xi32>
    %17 = arith.remsi %13, %16 : vector<64x32xi32>
    %c0_i32_12 = arith.constant 0 : i32
    %18 = vector.broadcast %c0_i32_12 : i32 to vector<64x32xi32>
    %19 = arith.cmpi ne, %17, %18 : vector<64x32xi32>
    %c0_i32_13 = arith.constant 0 : i32
    %20 = vector.broadcast %c0_i32_13 : i32 to vector<64x32xi32>
    %21 = arith.cmpi slt, %17, %20 : vector<64x32xi32>
    %c0_i32_14 = arith.constant 0 : i32
    %22 = arith.cmpi slt, %15, %c0_i32_14 : i32
    %23 = vector.broadcast %22 : i1 to vector<64x32xi1>
    %24 = vector.broadcast %23 : vector<64x32xi1> to vector<64x32xi1>
    %25 = arith.xori %21, %24 : vector<64x32xi1>
    %26 = arith.andi %25, %19 : vector<64x32xi1>
    %27 = vector.broadcast %15 : i32 to vector<64x32xi32>
    %28 = arith.addi %17, %27 : vector<64x32xi32>
    %29 = arith.select %26, %28, %17 : vector<64x32xi1>, vector<64x32xi32>
    %c0_i32_15 = arith.constant 0 : i32
    %30 = vector.broadcast %c0_i32_15 : i32 to vector<64x32xi32>
    %31 = arith.cmpi eq, %29, %30 : vector<64x32xi32>
    %c7_i32 = arith.constant 7 : i32
    %32 = vector.broadcast %c7_i32 : i32 to vector<64x32xi32>
    %33 = arith.cmpi eq, %29, %32 : vector<64x32xi32>
    %cst_16 = arith.constant 0.000000e+00 : f32
    %34 = vector.broadcast %cst_16 : f32 to vector<64x32xf32>
    %c0_17 = arith.constant 0 : index
    %c0_18 = arith.constant 0 : index
    %35 = vector.load %arg5[%c0_17, %c0_18] : memref<1x32xf32, #tpu.memory_space<vmem>>, vector<1x32xf32>
    %36 = vector.broadcast %35 : vector<1x32xf32> to vector<64x32xf32>
    %37 = arith.addf %34, %36 : vector<64x32xf32>
    %c7 = arith.constant 7 : index
    %c0_19 = arith.constant 0 : index
    %38 = vector.load %arg9[%c7, %c0_19] : memref<96x32xf32, #tpu.memory_space<vmem>>, vector<64x32xf32>
    %cst_20 = arith.constant 0.000000e+00 : f32
    %39 = vector.broadcast %cst_20 : f32 to vector<64x32xf32>
    %40 = arith.select %31, %39, %38 : vector<64x32xi1>, vector<64x32xf32>
    %c0_21 = arith.constant 0 : index
    %c0_22 = arith.constant 0 : index
    %c0_23 = arith.constant 0 : index
    %41 = vector.load %arg4[%c0_21, %c0_22, %c0_23] : memref<9x32x32xf32, #tpu.memory_space<vmem>>, vector<1x32x32xf32>
    %42 = vector.shape_cast %41 : vector<1x32x32xf32> to vector<32x32xf32>
    %cst_24 = arith.constant dense<0.000000e+00> : vector<64x32xf32>
    %43 = tpu.matmul %40, %42, %cst_24 {dimension_numbers = #tpu.dot_dimension_numbers<[1], [0], [0], [1], [0, 0, 1, 1], [], []>} : vector<64x32xf32>, vector<32x32xf32>, vector<64x32xf32> -> vector<64x32xf32>
    %44 = arith.addf %37, %43 : vector<64x32xf32>
    %c8 = arith.constant 8 : index
    %c0_25 = arith.constant 0 : index
    %45 = vector.load %arg9[%c8, %c0_25] : memref<96x32xf32, #tpu.memory_space<vmem>>, vector<64x32xf32>
    %c1 = arith.constant 1 : index
    %c0_26 = arith.constant 0 : index
    %c0_27 = arith.constant 0 : index
    %46 = vector.load %arg4[%c1, %c0_26, %c0_27] : memref<9x32x32xf32, #tpu.memory_space<vmem>>, vector<1x32x32xf32>
    %47 = vector.shape_cast %46 : vector<1x32x32xf32> to vector<32x32xf32>
    %cst_28 = arith.constant dense<0.000000e+00> : vector<64x32xf32>
    %48 = tpu.matmul %45, %47, %cst_28 {dimension_numbers = #tpu.dot_dimension_numbers<[1], [0], [0], [1], [0, 0, 1, 1], [], []>} : vector<64x32xf32>, vector<32x32xf32>, vector<64x32xf32> -> vector<64x32xf32>
    %49 = arith.addf %44, %48 : vector<64x32xf32>
    %c9 = arith.constant 9 : index
    %c0_29 = arith.constant 0 : index
    %50 = vector.load %arg9[%c9, %c0_29] : memref<96x32xf32, #tpu.memory_space<vmem>>, vector<64x32xf32>
    %cst_30 = arith.constant 0.000000e+00 : f32
    %51 = vector.broadcast %cst_30 : f32 to vector<64x32xf32>
    %52 = arith.select %33, %51, %50 : vector<64x32xi1>, vector<64x32xf32>
    %c2 = arith.constant 2 : index
    %c0_31 = arith.constant 0 : index
    %c0_32 = arith.constant 0 : index
    %53 = vector.load %arg4[%c2, %c0_31, %c0_32] : memref<9x32x32xf32, #tpu.memory_space<vmem>>, vector<1x32x32xf32>
    %54 = vector.shape_cast %53 : vector<1x32x32xf32> to vector<32x32xf32>
    %cst_33 = arith.constant dense<0.000000e+00> : vector<64x32xf32>
    %55 = tpu.matmul %52, %54, %cst_33 {dimension_numbers = #tpu.dot_dimension_numbers<[1], [0], [0], [1], [0, 0, 1, 1], [], []>} : vector<64x32xf32>, vector<32x32xf32>, vector<64x32xf32> -> vector<64x32xf32>
    %56 = arith.addf %49, %55 : vector<64x32xf32>
    %c15 = arith.constant 15 : index
    %c0_34 = arith.constant 0 : index
    %57 = vector.load %arg9[%c15, %c0_34] : memref<96x32xf32, #tpu.memory_space<vmem>>, vector<64x32xf32>
    %cst_35 = arith.constant 0.000000e+00 : f32
    %58 = vector.broadcast %cst_35 : f32 to vector<64x32xf32>
    %59 = arith.select %31, %58, %57 : vector<64x32xi1>, vector<64x32xf32>
    %c3 = arith.constant 3 : index
    %c0_36 = arith.constant 0 : index
    %c0_37 = arith.constant 0 : index
    %60 = vector.load %arg4[%c3, %c0_36, %c0_37] : memref<9x32x32xf32, #tpu.memory_space<vmem>>, vector<1x32x32xf32>
    %61 = vector.shape_cast %60 : vector<1x32x32xf32> to vector<32x32xf32>
    %cst_38 = arith.constant dense<0.000000e+00> : vector<64x32xf32>
    %62 = tpu.matmul %59, %61, %cst_38 {dimension_numbers = #tpu.dot_dimension_numbers<[1], [0], [0], [1], [0, 0, 1, 1], [], []>} : vector<64x32xf32>, vector<32x32xf32>, vector<64x32xf32> -> vector<64x32xf32>
    %63 = arith.addf %56, %62 : vector<64x32xf32>
    %c16_39 = arith.constant 16 : index
    %c0_40 = arith.constant 0 : index
    %64 = vector.load %arg9[%c16_39, %c0_40] : memref<96x32xf32, #tpu.memory_space<vmem>>, vector<64x32xf32>
    %c4 = arith.constant 4 : index
    %c0_41 = arith.constant 0 : index
    %c0_42 = arith.constant 0 : index
    %65 = vector.load %arg4[%c4, %c0_41, %c0_42] : memref<9x32x32xf32, #tpu.memory_space<vmem>>, vector<1x32x32xf32>
    %66 = vector.shape_cast %65 : vector<1x32x32xf32> to vector<32x32xf32>
    %cst_43 = arith.constant dense<0.000000e+00> : vector<64x32xf32>
    %67 = tpu.matmul %64, %66, %cst_43 {dimension_numbers = #tpu.dot_dimension_numbers<[1], [0], [0], [1], [0, 0, 1, 1], [], []>} : vector<64x32xf32>, vector<32x32xf32>, vector<64x32xf32> -> vector<64x32xf32>
    %68 = arith.addf %63, %67 : vector<64x32xf32>
    %c17 = arith.constant 17 : index
    %c0_44 = arith.constant 0 : index
    %69 = vector.load %arg9[%c17, %c0_44] : memref<96x32xf32, #tpu.memory_space<vmem>>, vector<64x32xf32>
    %cst_45 = arith.constant 0.000000e+00 : f32
    %70 = vector.broadcast %cst_45 : f32 to vector<64x32xf32>
    %71 = arith.select %33, %70, %69 : vector<64x32xi1>, vector<64x32xf32>
    %c5 = arith.constant 5 : index
    %c0_46 = arith.constant 0 : index
    %c0_47 = arith.constant 0 : index
    %72 = vector.load %arg4[%c5, %c0_46, %c0_47] : memref<9x32x32xf32, #tpu.memory_space<vmem>>, vector<1x32x32xf32>
    %73 = vector.shape_cast %72 : vector<1x32x32xf32> to vector<32x32xf32>
    %cst_48 = arith.constant dense<0.000000e+00> : vector<64x32xf32>
    %74 = tpu.matmul %71, %73, %cst_48 {dimension_numbers = #tpu.dot_dimension_numbers<[1], [0], [0], [1], [0, 0, 1, 1], [], []>} : vector<64x32xf32>, vector<32x32xf32>, vector<64x32xf32> -> vector<64x32xf32>
    %75 = arith.addf %68, %74 : vector<64x32xf32>
    %c23 = arith.constant 23 : index
    %c0_49 = arith.constant 0 : index
    %76 = vector.load %arg9[%c23, %c0_49] : memref<96x32xf32, #tpu.memory_space<vmem>>, vector<64x32xf32>
    %cst_50 = arith.constant 0.000000e+00 : f32
    %77 = vector.broadcast %cst_50 : f32 to vector<64x32xf32>
    %78 = arith.select %31, %77, %76 : vector<64x32xi1>, vector<64x32xf32>
    %c6 = arith.constant 6 : index
    %c0_51 = arith.constant 0 : index
    %c0_52 = arith.constant 0 : index
    %79 = vector.load %arg4[%c6, %c0_51, %c0_52] : memref<9x32x32xf32, #tpu.memory_space<vmem>>, vector<1x32x32xf32>
    %80 = vector.shape_cast %79 : vector<1x32x32xf32> to vector<32x32xf32>
    %cst_53 = arith.constant dense<0.000000e+00> : vector<64x32xf32>
    %81 = tpu.matmul %78, %80, %cst_53 {dimension_numbers = #tpu.dot_dimension_numbers<[1], [0], [0], [1], [0, 0, 1, 1], [], []>} : vector<64x32xf32>, vector<32x32xf32>, vector<64x32xf32> -> vector<64x32xf32>
    %82 = arith.addf %75, %81 : vector<64x32xf32>
    %c24 = arith.constant 24 : index
    %c0_54 = arith.constant 0 : index
    %83 = vector.load %arg9[%c24, %c0_54] : memref<96x32xf32, #tpu.memory_space<vmem>>, vector<64x32xf32>
    %c7_55 = arith.constant 7 : index
    %c0_56 = arith.constant 0 : index
    %c0_57 = arith.constant 0 : index
    %84 = vector.load %arg4[%c7_55, %c0_56, %c0_57] : memref<9x32x32xf32, #tpu.memory_space<vmem>>, vector<1x32x32xf32>
    %85 = vector.shape_cast %84 : vector<1x32x32xf32> to vector<32x32xf32>
    %cst_58 = arith.constant dense<0.000000e+00> : vector<64x32xf32>
    %86 = tpu.matmul %83, %85, %cst_58 {dimension_numbers = #tpu.dot_dimension_numbers<[1], [0], [0], [1], [0, 0, 1, 1], [], []>} : vector<64x32xf32>, vector<32x32xf32>, vector<64x32xf32> -> vector<64x32xf32>
    %87 = arith.addf %82, %86 : vector<64x32xf32>
    %c25 = arith.constant 25 : index
    %c0_59 = arith.constant 0 : index
    %88 = vector.load %arg9[%c25, %c0_59] : memref<96x32xf32, #tpu.memory_space<vmem>>, vector<64x32xf32>
    %cst_60 = arith.constant 0.000000e+00 : f32
    %89 = vector.broadcast %cst_60 : f32 to vector<64x32xf32>
    %90 = arith.select %33, %89, %88 : vector<64x32xi1>, vector<64x32xf32>
    %c8_61 = arith.constant 8 : index
    %c0_62 = arith.constant 0 : index
    %c0_63 = arith.constant 0 : index
    %91 = vector.load %arg4[%c8_61, %c0_62, %c0_63] : memref<9x32x32xf32, #tpu.memory_space<vmem>>, vector<1x32x32xf32>
    %92 = vector.shape_cast %91 : vector<1x32x32xf32> to vector<32x32xf32>
    %cst_64 = arith.constant dense<0.000000e+00> : vector<64x32xf32>
    %93 = tpu.matmul %90, %92, %cst_64 {dimension_numbers = #tpu.dot_dimension_numbers<[1], [0], [0], [1], [0, 0, 1, 1], [], []>} : vector<64x32xf32>, vector<32x32xf32>, vector<64x32xf32> -> vector<64x32xf32>
    %94 = arith.addf %87, %93 : vector<64x32xf32>
    %cst_65 = arith.constant 0.000000e+00 : f32
    %95 = vector.broadcast %cst_65 : f32 to vector<64x32xf32>
    %96 = arith.maximumf %94, %95 : vector<64x32xf32>
    %c0_66 = arith.constant 0 : index
    %c0_67 = arith.constant 0 : index
    %97 = vector.load %arg6[%c0_66, %c0_67] : memref<32x128xf32, #tpu.memory_space<vmem>>, vector<32x128xf32>
    %cst_68 = arith.constant dense<0.000000e+00> : vector<64x128xf32>
    %98 = tpu.matmul %96, %97, %cst_68 {dimension_numbers = #tpu.dot_dimension_numbers<[1], [0], [0], [1], [0, 0, 1, 1], [], []>} : vector<64x32xf32>, vector<32x128xf32>, vector<64x128xf32> -> vector<64x128xf32>
    %c0_69 = arith.constant 0 : index
    %c0_70 = arith.constant 0 : index
    %99 = vector.load %arg7[%c0_69, %c0_70] : memref<1x128xf32, #tpu.memory_space<vmem>>, vector<1x128xf32>
    %100 = vector.broadcast %99 : vector<1x128xf32> to vector<64x128xf32>
    %101 = arith.addf %98, %100 : vector<64x128xf32>
    %cst_71 = arith.constant 0.000000e+00 : f32
    %102 = vector.broadcast %cst_71 : f32 to vector<64x128xf32>
    %103 = arith.maximumf %101, %102 : vector<64x128xf32>
    %104 = arith.addf %103, %1 : vector<64x128xf32>
    %cst_72 = arith.constant 0.000000e+00 : f32
    %105 = vector.broadcast %cst_72 : f32 to vector<64x128xf32>
    %106 = arith.maximumf %104, %105 : vector<64x128xf32>
    %c0_73 = arith.constant 0 : index
    %c0_74 = arith.constant 0 : index
    %c0_75 = arith.constant 0 : index
    %107 = vector.load %arg8[%c0_73, %c0_74, %c0_75] : memref<1x64x128xf32, #tpu.memory_space<vmem>>, vector<1x64x128xf32>
    %108 = vector.shape_cast %107 : vector<1x64x128xf32> to vector<64x128xf32>
    %109 = vector.shape_cast %106 : vector<64x128xf32> to vector<1x64x128xf32>
    tpu.vector_store %arg8[%c0_73, %c0_74, %c0_75], %109 {strides = array<i32>} : memref<1x64x128xf32, #tpu.memory_space<vmem>>, vector<1x64x128xf32>,
    return
  }
  func.func @transform_0(%arg0: i32) -> (i32, i32, i32) {
    %c0_i32 = arith.constant 0 : i32
    %c0_i32_0 = arith.constant 0 : i32
    %c0_i32_1 = arith.constant 0 : i32
    return %arg0, %c0_i32, %c0_i32_0 : i32, i32, i32
  }
  func.func @transform_1(%arg0: i32) -> (i32, i32) {
    %c0_i32 = arith.constant 0 : i32
    %c0_i32_0 = arith.constant 0 : i32
    %c0_i32_1 = arith.constant 0 : i32
    return %c0_i32, %c0_i32_0 : i32, i32
  }
  func.func @transform_2(%arg0: i32) -> (i32, i32) {
    %c0_i32 = arith.constant 0 : i32
    %c0_i32_0 = arith.constant 0 : i32
    %c0_i32_1 = arith.constant 0 : i32
    return %c0_i32, %c0_i32_0 : i32, i32
  }
  func.func @transform_3(%arg0: i32) -> (i32, i32, i32) {
    %c0_i32 = arith.constant 0 : i32
    %c0_i32_0 = arith.constant 0 : i32
    %c0_i32_1 = arith.constant 0 : i32
    %c0_i32_2 = arith.constant 0 : i32
    return %c0_i32, %c0_i32_0, %c0_i32_1 : i32, i32, i32
  }
  func.func @transform_4(%arg0: i32) -> (i32, i32) {
    %c0_i32 = arith.constant 0 : i32
    %c0_i32_0 = arith.constant 0 : i32
    %c0_i32_1 = arith.constant 0 : i32
    return %c0_i32, %c0_i32_0 : i32, i32
  }
  func.func @transform_5(%arg0: i32) -> (i32, i32) {
    %c0_i32 = arith.constant 0 : i32
    %c0_i32_0 = arith.constant 0 : i32
    %c0_i32_1 = arith.constant 0 : i32
    return %c0_i32, %c0_i32_0 : i32, i32
  }
  func.func @transform_6(%arg0: i32) -> (i32, i32) {
    %c0_i32 = arith.constant 0 : i32
    %c0_i32_0 = arith.constant 0 : i32
    %c0_i32_1 = arith.constant 0 : i32
    return %c0_i32, %c0_i32_0 : i32, i32
  }
  func.func @transform_7(%arg0: i32) -> (i32, i32, i32) {
    %c0_i32 = arith.constant 0 : i32
    %c0_i32_0 = arith.constant 0 : i32
    %c0_i32_1 = arith.constant 0 : i32
    return %arg0, %c0_i32, %c0_i32_0 : i32, i32, i32
  }
}

</mosaic_0001>

<bundles_post_ra>
// kernel: tpu_custom_call.1
= control target key start
LH: loop header
LB: loop body
LE: loop exit
PB: predicated region body
PF: predicated region fallthrough
CT: control target
= control target key end

     0   :  { %12 = vsyncpa [#allocation4], 0  ;;  %s2528_s0 = inlined_call_operand.vmem [shape: f32[2,64,128], index: 0, kind: input, shape index: {}]   ;;  %s2529_s1 = inlined_call_operand.vmem [shape: f32[128,32], index: 1, kind: input, shape index: {}]   ;;  %s2530_s2 = inlined_call_operand.vmem [shape: f32[1,32], index: 2, kind: input, shape index: {}]   ;;  %s2531_s3 = inlined_call_operand.hbm [shape: f32[9,32,32], index: 3, kind: input, shape index: {}]   ;;  %s2532_s4 = inlined_call_operand.vmem [shape: f32[1,32], index: 4, kind: input, shape index: {}]   ;;  %s2533_s5 = inlined_call_operand.vmem [shape: f32[32,128], index: 5, kind: input, shape index: {}]   ;;  %s2534_s6 = inlined_call_operand.vmem [shape: f32[1,128], index: 6, kind: input, shape index: {}]   ;;  %s2535_s7 = inlined_call_operand.hbm [shape: f32[2,64,128], index: 7, kind: output, shape index: {}]  }
   0x1   :  { %13 = vsyncpa [#allocation5], 0 }
   0x2   :  { %15 = vsyncpa [#allocation5 + $0x1], 0  ;;  %s1844_s24 = smov 0   ;;  %s1846_s25 = smov 0  }
   0x3   :  { %s1848_s26 = smov 0   ;;  %s1850_s27 = smov 0  }
   0x4 LB: > { %s1865_s28 = sadd.s32 4294967295, %s1796_s27   ;;  %s1534_s29 = sadd.s32 4294967294, %s1796_s27   ;;  %s1796_s27 = sphi %s1850_s27, %s2576_s27   ;;  %s1792_s26 = sphi %s1848_s26, %s2575_s26   ;;  %s1788_s25 = sphi %s1846_s25, %s2574_s25   ;;  %s1784_s24 = sphi %s1844_s24, %s2573_s24  }
   0x5   : > { %s1869_s30 = sadd.s32 1, %s1796_s27   ;;  %s180_s8 = sadd.s32 1, %s1792_s26 }
   0x6   : > { %s177_s9 = ssub.s32 %s1796_s27, %s1869_s30  ;;  %p190_p0 = scmp.ne.s32.totalorder %s1792_s26, %s1788_s25 }
   0x7   : > { %p178_p1 = scmp.eq.s32.totalorder %s177_s9, 0  ;;  %p191_p2 = scmp.eq.s32.totalorder %s1865_s28, 1 }
   0x8   : > { %p196_p3 = scmp.ne.s32.totalorder %s1788_s25, %s1784_s24  ;;  %p197_p4 = scmp.eq.s32.totalorder %s1534_s29, 1 }
   0x9   : > { %s1880_s10 = scalar_select %p178_p1, %s1792_s26, %s180_s8  }
   0xa   : > { %p1882_p5 = por %p191_p2, %p190_p0  ;;  %p1886_p6 = por %p197_p4, %p196_p3 }
   0xb   : > { %p1535_p7 = scmp.ge.s32.totalorder %s1796_s27, 1  ;;  %p204_p8 = scmp.lt.s32.totalorder %s1796_s27, 3 }
   0xc   : > { %p1656_p9 = scmp.eq.s32.totalorder %s1865_s28, 0  ;;  %s221_s15 = sshll.u32 %s2531_s3, 4  ;;  %s222_s15 = int_to_ptr.hbm [resolvable:$true] %s221_s15 }
   0xd   : > { %p205_p10 = pnand %p1535_p7, %p204_p8  ;;  %s1798_s16 = smov [#allocation3]  }
   0xe   : > { %s223_s17 = sshll.u32 %s1798_s16, 4  ;;  %s1799_s18 = smov 128   ;;  %s224_s17 = int_to_ptr.vmem [resolvable:$true] %s223_s17 }
   0xf   : > { %p1648_p11 = pneg %p205_p10  ;;  %s1800_s19 = smov 8  }
  0x10   : > { %256 = sbr.rel (%p205_p10) target bundleno = 648 (0x288), region = 48 }
  0x11   : > { %p1649_p12 = pnand %p1656_p9, %p1648_p11 }
  0x13   : > { %1651 = dma.hbm_to_vmem [thread:$0]  (!%p1649_p12), %s222_s15, 4608, %s224_s17, [#allocation4], %s1799_s18, %s1799_s18, %s1800_s19  }
  0x15   : > { %1775 = dma.done.wait (%p1656_p9), [#allocation4], 4608  }
  0x16   : > { %1777 = vsyncadd (%p1656_p9), [#allocation4], 4294962688  ;;  %v317_v0 = vld [vmem:[%s2529_s1 + $0x78] sm:$0xff]  ;;  %v316_v1 = vld [vmem:[%s2529_s1 + $0x70] sm:$0xff]  ;;  %p289_p13 = scmp.lt.s32.totalorder %s1865_s28, 1  ;;  %vm371_vm0 = vcmask 261120   ;;  %v384_v29 = vlaneseq }
  0x17   : > { %322 = vmatpush.msra.mxu0 %v317_v0  ;;  %v315_v2 = vld [vmem:[%s2529_s1 + $0x68] sm:$0xff]  ;;  %v314_v3 = vld [vmem:[%s2529_s1 + $0x60] sm:$0xff]  ;;  %v313_v4 = vld [vmem:[%s2529_s1 + $0x58] sm:$0xff]  ;;  %v1801_v22 = vmov 0.0   ;;  %s286_s15 = sand.u32 1, %s1788_s25   ;;  %s1629_s18 = sshll.u32 %s1865_s28, 6 }
  0x18   : > { %v312_v5 = vld [vmem:[%s2529_s1 + $0x50] sm:$0xff]  ;;  %v311_v6 = vld [vmem:[%s2529_s1 + $0x48] sm:$0xff]  ;;  %v310_v7 = vld [vmem:[%s2529_s1 + $0x40] sm:$0xff]  ;;  %s290_s14 = scalar_select %p289_p13, %s1865_s28, 1  ;;  %372 = vst.msk [vmem:[#allocation2] sm:$0xff] %vm371_vm0, %v1801_v22  ;;  %v1989_v30 = vshrl.u32 %v384_v29, 7 }
  0x19   : > { %323 = vmatpush.msra.mxu0 %v316_v1  ;;  %v309_v8 = vld [vmem:[%s2529_s1 + $0x38] sm:$0xff]  ;;  %v308_v9 = vld [vmem:[%s2529_s1 + $0x30] sm:$0xff]  ;;  %v307_v10 = vld [vmem:[%s2529_s1 + $0x28] sm:$0xff]  ;;  %373 = vst.msk [vmem:[#allocation2 + $0x8] sm:$0xff] %vm371_vm0, %v1801_v22  ;;  %s1540_s16 = sshll.u32 %s286_s15, 6  ;;  %s1456_s21 = scalar_lea.hbm %s2535_s7, %s1629_s18 }
  0x1a   : > { %v306_v11 = vld [vmem:[%s2529_s1 + $0x20] sm:$0xff]  ;;  %v305_v12 = vld [vmem:[%s2529_s1 + $0x18] sm:$0xff]  ;;  %s1628_s19 = sshll.u32 %s290_s14, 6  ;;  %v304_v13 = vld [vmem:[%s2529_s1 + $0x10] sm:$0xff]  ;;  %374 = vst.msk [vmem:[#allocation2 + $0x50] sm:$0xff] %vm371_vm0, %v1801_v22  ;;  %v397_v32 = vand.u32 7, %v1989_v30 }
  0x1b   : > { %324 = vmatpush.msra.mxu0 %v315_v2  ;;  %v303_v14 = vld [vmem:[%s2529_s1 + $0x8] sm:$0xff]  ;;  %s1952_s9 = scalar_lea.vmem %s2528_s0, %s1628_s19  ;;  %v302_v15 = vld [vmem:[%s2529_s1] sm:$0xff]  ;;  %v529_v20 = vld [vmem:[#allocation3 + $0x18] sm:$0xff]  ;;  %375 = vst.msk [vmem:[#allocation2 + $0x58] sm:$0xff] %vm371_vm0, %v1801_v22  ;;  %v386_v55 = vadd.s32 8, %v1989_v30  ;;  %v387_v62 = vadd.s32 16, %v1989_v30 }
  0x1c   : > { %v1958_v16 = vld [vmem:[%s1952_s9] sm:$0xff]  ;;  %v1962_v17 = vld [vmem:[%s1952_s9 + $0x8] sm:$0xff]  ;;  %v1966_v18 = vld [vmem:[%s1952_s9 + $0x10] sm:$0xff]  ;;  %1630 = vmatpush.msra.mxu1 %v529_v20  ;;  %vm1996_vm1 = vcmp.eq.s32.totalorder %v397_v32, 0  ;;  %vm2017_vm3 = vcmp.eq.s32.totalorder %v397_v32, 7  ;;  %s2477_s17 = scalar_lea.vmem [#allocation6], %s1540_s16 }
  0x1d   : > { %325 = vmatpush.msra.mxu0 %v314_v3  ;;  %v1970_v19 = vld [vmem:[%s1952_s9 + $0x18] sm:$0xff]  ;;  %v528_v21 = vld [vmem:[#allocation3 + $0x10] sm:$0xff]  ;;  %v527_v23 = vld [vmem:[#allocation3 + $0x8] sm:$0xff]  ;;  %v404_v57 = vand.u32 7, %v386_v55  ;;  %s1457_s22 = sshll.u32 %s2477_s17, 4  ;;  %s1459_s23 = sshll.u32 %s1456_s21, 4  ;;  %s1458_s22 = int_to_ptr.vmem [resolvable:$true] %s1457_s22  ;;  %s1460_s23 = int_to_ptr.hbm [resolvable:$true] %s1459_s23 }
  0x1e   : > { %1631 = vmatpush.msra.mxu1 %v528_v21  ;;  %v526_v24 = vld [vmem:[#allocation3] sm:$0xff]  ;;  %v615_v26 = vld [vmem:[#allocation3 + $0x38] sm:$0xff]  ;;  %v1982_v27 = vld [vmem:[%s1952_s9 + $0x28] sm:$0xff]  ;;  %s1445_s28 = scalar_lea.sflag [#allocation5], %s286_s15  ;;  %s1744_s29 = sshra.s32 %s1460_s23, 4  ;;  %s1745_s29 = int_to_ptr.hbm [resolvable:$true] %s1744_s29 }
  0x1f   : > { %326 = vmatpush.msra.mxu0 %v313_v4  ;;  %v1978_v25 = vld [vmem:[%s1952_s9 + $0x20] sm:$0xff]  ;;  %1634 = vmatpush.msra.mxu2 %v615_v26  ;;  %v1986_v28 = vld [vmem:[%s1952_s9 + $0x30] sm:$0xff]  ;;  %v1992_v31 = vld [vmem:[%s1952_s9 + $0x38] sm:$0xff]  ;;  %vm2013_vm2 = vcmp.eq.s32.totalorder %v404_v57, 0  ;;  %vm2041_vm5 = vcmp.eq.s32.totalorder %v404_v57, 7  ;;  %s1746_s8 = scalar_lea.hbm %s1745_s29, 64  ;;  %p1751_p3 = scmp.lt.s32.totalorder %s1745_s29, %s2535_s7 }
  0x20   : > { %1632 = vmatpush.msra.mxu1 %v527_v23  ;;  %v510_v34 = vld [vmem:[#allocation2 + $0x7] sm:$0xff]  ;;  %v614_v36 = vld [vmem:[#allocation3 + $0x30] sm:$0xff]  ;;  %v709_v40 = vld [vmem:[#allocation3 + $0x58] sm:$0xff]  ;;  %p1747_p0 = scmp.ne.s32.totalorder %s1745_s29, %s1746_s8  ;;  %s1750_s14 = scalar_lea.hbm %s2535_s7, 128 }
  0x21   : > { %327 = vmatpush.msra.mxu0 %v312_v5  ;;  %v518_v35 = vsel %vm1996_vm1, 0.0, %v510_v34  ;;  %1635 = vmatpush.msra.mxu2 %v614_v36  ;;  %v613_v37 = vld [vmem:[#allocation3 + $0x28] sm:$0xff]  ;;  %v612_v38 = vld [vmem:[#allocation3 + $0x20] sm:$0xff]  ;;  %v708_v41 = vld [vmem:[#allocation3 + $0x50] sm:$0xff]  ;;  %p1752_p4 = scmp.lt.s32.totalorder %s1750_s14, %s1746_s8 }
  0x22   : > { %1633 = vmatpush.msra.mxu1 %v526_v24  ;;  %v603_v39 = vld [vmem:[#allocation2 + $0x8] sm:$0xff]  ;;  %1638 = vmatpush.msra.mxu3 %v709_v40  ;;  %v706_v43 = vld [vmem:[#allocation3 + $0x40] sm:$0xff]  ;;  %v889_v44 = vld [vmem:[#allocation3 + $0x98] sm:$0xff]  ;;  %p1748_p1 = pnand %p1747_p0, %p1882_p5 }
  0x23   : > { %328 = vmatpush.msra.mxu0 %v311_v6  ;;  %1636 = vmatpush.msra.mxu2 %v613_v37  ;;  %v707_v42 = vld [vmem:[#allocation3 + $0x48] sm:$0xff]  ;;  %v1077_v45 = vld [vmem:[#allocation3 + $0xd8] sm:$0xff]  ;;  %v1076_v46 = vld [vmem:[#allocation3 + $0xd0] sm:$0xff]  ;;  %p1753_p7 = por %p1752_p4, %p1751_p3 }
  0x24   : > { %1639 = vmatpush.msra.mxu3 %v708_v41  ;;  %v1075_v47 = vld [vmem:[#allocation3 + $0xc8] sm:$0xff]  ;;  %v1074_v48 = vld [vmem:[#allocation3 + $0xc0] sm:$0xff]  ;;  %v803_v49 = vld [vmem:[#allocation3 + $0x78] sm:$0xff]  ;;  %p1749_p2 = pneg %p1748_p1 }
  0x25   : > { %329 = vmatpush.msra.mxu0 %v310_v7  ;;  %1637 = vmatpush.msra.mxu2 %v612_v38  ;;  %v2007_v50 = vld [vmem:[%s2530_s2] ss:$0 sm:$0xff]  ;;  %v888_v51 = vld [vmem:[#allocation3 + $0x90] sm:$0xff]  ;;  %v887_v5 = vld [vmem:[#allocation3 + $0x88] sm:$0xff]  ;;  %v411_v7 = vand.u32 7, %v387_v62 }
  0x26   : > { %1640 = vmatpush.msra.mxu3 %v707_v42  ;;  %840 = vmatpush.msrb.mxu1 %v803_v49  ;;  %v802_v52 = vld [vmem:[#allocation3 + $0x70] sm:$0xff]  ;;  %v801_v6 = vld [vmem:[#allocation3 + $0x68] sm:$0xff]  ;;  %v1257_v62 = vld [vmem:[#allocation3 + $0x118] sm:$0xff]  ;;  %p1754_p8 = pnand %p1753_p7, %p1749_p2 }
  0x27   : > { %330 = vmatpush.msra.mxu0 %v309_v8  ;;  %926 = vmatpush.msrb.mxu2 %v889_v44  ;;  %vm2037_vm4 = vcmp.eq.s32.totalorder %v411_v7, 0  ;;  %vm2072_vm7 = vcmp.eq.s32.totalorder %v411_v7, 7  ;;  %v800_v44 = vld [vmem:[#allocation3 + $0x60] sm:$0xff] }
  0x28   : > { %1641 = vmatpush.msra.mxu3 %v706_v43  ;;  %841 = vmatpush.msrb.mxu1 %v802_v52  ;;  %v390_v52 = vadd.s32 40, %v1989_v30 }
  0x29   : > { %331 = vmatpush.msra.mxu0 %v308_v9  ;;  %927 = vmatpush.msrb.mxu2 %v888_v51  ;;  %v2556_v51 = vmov 0 }
  0x2a   : > { %842 = vmatpush.msrb.mxu1 %v801_v6 }
  0x2b   : > { %332 = vmatpush.msra.mxu0 %v307_v10  ;;  %928 = vmatpush.msrb.mxu2 %v887_v5  ;;  %v1163_v5 = vld [vmem:[#allocation3 + $0xf8] sm:$0xff] }
  0x2c   : > { %843 = vmatpush.msrb.mxu1 %v800_v44 }
  0x2d   : > { %333 = vmatpush.msra.mxu0 %v306_v11 }
  0x2f   : > { %334 = vmatpush.msra.mxu0 %v305_v12  ;;  %v388_v12 = vadd.s32 24, %v1989_v30 }
  0x31   : > { %335 = vmatpush.msra.mxu0 %v304_v13 }
  0x33   : > { %336 = vmatpush.msra.mxu0 %v303_v14 }
  0x35   : > { %337 = vmatpush.msra.mxu0 %v302_v15 }
  0x36   : > { %338 = vmatmul.f32.vlgmr.msra.gmra.mxu0 %v1958_v16 }
  0x37   : > { %566 = vmatpush.msrb.mxu0 %v529_v20 }
  0x39   : > { %567 = vmatpush.msrb.mxu0 %v528_v21 }
  0x3b   : > { %568 = vmatpush.msrb.mxu0 %v527_v23 }
  0x3d   : > { %569 = vmatpush.msrb.mxu0 %v526_v24  ;;  %v418_v24 = vand.u32 7, %v388_v12 }
  0x3e   : > { %341 = vmatmul.f32.gmra.mxu0 %v1962_v17 }
  0x3f   : > { %652 = vmatpush.msra.mxu0 %v615_v26  ;;  %v886_v26 = vld [vmem:[#allocation3 + $0x80] sm:$0xff]  ;;  %vm2068_vm6 = vcmp.eq.s32.totalorder %v418_v24, 0  ;;  %vm2106_vm9 = vcmp.eq.s32.totalorder %v418_v24, 7 }
  0x40   : > { %929 = vmatpush.msrb.mxu2 %v886_v26  ;;  %v2557_v51 = vsel %vm2106_vm9, 4294967295, %v2556_v51 }
  0x41   : > { %653 = vmatpush.msra.mxu0 %v614_v36  ;;  %v389_v36 = vadd.s32 32, %v1989_v30 }
  0x43   : > { %654 = vmatpush.msra.mxu0 %v613_v37 }
  0x45   : > { %655 = vmatpush.msra.mxu0 %v612_v38 }
  0x46   : > { %344 = vmatmul.f32.gmra.mxu0 %v1966_v18 }
  0x4e   : > { %347 = vmatmul.f32.gmra.mxu0 %v1970_v19 }
  0x56   : > { %350 = vmatmul.f32.gmra.mxu0 %v1978_v25 }
  0x5e   : > { %353 = vmatmul.f32.gmra.mxu0 %v1982_v27 }
  0x66   : > { %356 = vmatmul.f32.gmra.mxu0 %v1986_v28 }
  0x6e   : > { %359 = vmatmul.f32.gmra.mxu0 %v1992_v31 }
  0x76   : > { %1543 = vmatmul.msk.f32.vlgmr.msrb.gmra.mxu0 %vm371_vm0, %v518_v35 }
  0x77   : > { %746 = vmatpush.msrb.mxu0 %v709_v40 }
  0x79   : > { %747 = vmatpush.msrb.mxu0 %v708_v41 }
  0x7b   : > { %748 = vmatpush.msrb.mxu0 %v707_v42 }
  0x7d   : > { %749 = vmatpush.msrb.mxu0 %v706_v43 }
  0x7e   : > { %1551 = vmatmul.msk.f32.vlgmr.msra.gmra.mxu0 %vm371_vm0, %v603_v39 }
  0x7f   : > { %1114 = vmatpush.msra.mxu0 %v1077_v45  ;;  %v425_v45 = vand.u32 7, %v389_v36  ;;  %v980_v36 = vld [vmem:[#allocation3 + $0xa0] sm:$0xff] }
  0x81   : > { %1115 = vmatpush.msra.mxu0 %v1076_v46  ;;  %vm2102_vm8 = vcmp.eq.s32.totalorder %v425_v45, 0  ;;  %vm2140_vm11 = vcmp.eq.s32.totalorder %v425_v45, 7 }
  0x83   : > { %1116 = vmatpush.msra.mxu0 %v1075_v47 }
  0x85   : > { %1117 = vmatpush.msra.mxu0 %v1074_v48 }
  0xb3   : > { %v339_v53 = vpop.f32.mrf.mxu0 }
  0xb4   : > { %v340_v54 = vadd.f32 %v2007_v50, %v339_v53 }
  0xb6   : > { %v363_v56 = vmax.f32 %v340_v54, 0.0 }
  0xb8   : > { %376 = vst.msk [vmem:[#allocation2 + $0x10] sm:$0xff] %vm371_vm0, %v363_v56 }
  0xbb   : > { %v342_v58 = vpop.f32.mrf.mxu0 }
  0xbc   : > { %v343_v59 = vadd.f32 %v2007_v50, %v342_v58 }
  0xbe   : > { %v364_v63 = vmax.f32 %v343_v59, 0.0 }
  0xbf   : > { %v2022_v0 = vld [vmem:[#allocation2 + $0x10] sm:$0xff] }
  0xc0   : > { %v2024_v1 = vld [vmem:[#allocation2 + $0xf] sm:$0xff]  ;;  %377 = vst.msk [vmem:[#allocation2 + $0x18] sm:$0xff] %vm371_vm0, %v364_v63  ;;  %1552 = vmatmul.msk.f32.vlgmr.msra.gmra.mxu2 %vm371_vm0, %v2022_v0  ;;  %v432_v63 = vand.u32 7, %v390_v52 }
  0xc1   : > { %v689_v2 = vld [vmem:[#allocation2 + $0x9] sm:$0xff]  ;;  %v519_v3 = vsel %vm2013_vm2, 0.0, %v2024_v1  ;;  %1294 = vmatpush.msra.mxu2 %v1257_v62 }
  0xc2   : > { %v697_v4 = vsel %vm2017_vm3, 0.0, %v689_v2  ;;  %1544 = vmatmul.msk.f32.vlgmr.msra.gmra.mxu1 %vm371_vm0, %v519_v3  ;;  %v983_v3 = vld [vmem:[#allocation3 + $0xb8] sm:$0xff]  ;;  %vm2136_vm10 = vcmp.eq.s32.totalorder %v432_v63, 0  ;;  %vm2174_vm13 = vcmp.eq.s32.totalorder %v432_v63, 7  ;;  %v1256_v62 = vld [vmem:[#allocation3 + $0x110] sm:$0xff] }
  0xc3   : > { %1559 = vmatmul.msk.f32.vlgmr.msrb.gmra.mxu0 %vm371_vm0, %v697_v4  ;;  %v345_v8 = vpop.f32.mrf.mxu0  ;;  %v982_v4 = vld [vmem:[#allocation3 + $0xb0] sm:$0xff]  ;;  %1020 = vmatpush.msrb.mxu3 %v983_v3 }
  0xc4   : > { %v346_v9 = vadd.f32 %v2007_v50, %v345_v8  ;;  %1200 = vmatpush.msra.mxu1 %v1163_v5  ;;  %v981_v8 = vld [vmem:[#allocation3 + $0xa8] sm:$0xff]  ;;  %v1162_v3 = vld [vmem:[#allocation3 + $0xf0] sm:$0xff]  ;;  %1295 = vmatpush.msra.mxu2 %v1256_v62 }
  0xc5   : > { %1021 = vmatpush.msrb.mxu3 %v982_v4  ;;  %v1161_v62 = vld [vmem:[#allocation3 + $0xe8] sm:$0xff] }
  0xc6   : > { %v365_v13 = vmax.f32 %v346_v9, 0.0  ;;  %1201 = vmatpush.msra.mxu1 %v1162_v3  ;;  %v1160_v3 = vld [vmem:[#allocation3 + $0xe0] sm:$0xff] }
  0xc7   : > { %v2046_v14 = vld [vmem:[#allocation2 + $0x18] sm:$0xff]  ;;  %1022 = vmatpush.msrb.mxu3 %v981_v8  ;;  %v1341_v8 = vld [vmem:[%s2533_s5 + $0x10] sm:$0xff] }
  0xc8   : > { %v2048_v15 = vld [vmem:[#allocation2 + $0x17] sm:$0xff]  ;;  %378 = vst.msk [vmem:[#allocation2 + $0x20] sm:$0xff] %vm371_vm0, %v365_v13  ;;  %1553 = vmatmul.msk.f32.gmra.mxu2 %vm371_vm0, %v2046_v14  ;;  %v391_v13 = vadd.s32 48, %v1989_v30  ;;  %1202 = vmatpush.msra.mxu1 %v1161_v62 }
  0xc9   : > { %v2050_v20 = vld [vmem:[#allocation2 + $0x11] sm:$0xff]  ;;  %v520_v21 = vsel %vm2037_vm4, 0.0, %v2048_v15  ;;  %v1065_v23 = vsel %vm1996_vm1, 0.0, %v2048_v15  ;;  %1023 = vmatpush.msrb.mxu3 %v980_v36  ;;  %v792_v33 = vsel %vm2013_vm2, 0.0, %v2048_v15  ;;  %v1254_v15 = vld [vmem:[#allocation3 + $0x100] sm:$0xff] }
  0xca   : > { %v698_v22 = vsel %vm2041_vm5, 0.0, %v2050_v20  ;;  %1545 = vmatmul.msk.f32.gmra.mxu1 %vm371_vm0, %v520_v21 }
  0xcb   : > { %1560 = vmatmul.msk.f32.vlgmr.msra.gmra.mxu3 %vm371_vm0, %v698_v22  ;;  %1591 = vmatmul.msk.f32.vlgmr.msra.gmra.mxu0 %vm371_vm0, %v1065_v23  ;;  %v348_v29 = vpop.f32.mrf.mxu0 }
  0xcc   : > { %v349_v32 = vadd.f32 %v2007_v50, %v348_v29  ;;  %1203 = vmatpush.msra.mxu1 %v1160_v3 }
  0xce   : > { %v366_v37 = vmax.f32 %v349_v32, 0.0 }
  0xcf   : > { %v2077_v38 = vld [vmem:[#allocation2 + $0x20] sm:$0xff] }
  0xd0   : > { %v2079_v39 = vld [vmem:[#allocation2 + $0x1f] sm:$0xff]  ;;  %379 = vst.msk [vmem:[#allocation2 + $0x28] sm:$0xff] %vm371_vm0, %v366_v37  ;;  %1554 = vmatmul.msk.f32.gmra.mxu2 %vm371_vm0, %v2077_v38  ;;  %v439_v37 = vand.u32 7, %v391_v13 }
  0xd1   : > { %v2081_v40 = vld [vmem:[#allocation2 + $0x19] sm:$0xff]  ;;  %v521_v41 = vsel %vm2068_vm6, 0.0, %v2079_v39  ;;  %v1066_v43 = vsel %vm2013_vm2, 0.0, %v2079_v39 }
  0xd2   : > { %v699_v42 = vsel %vm2072_vm7, 0.0, %v2081_v40  ;;  %1546 = vmatmul.msk.f32.gmra.mxu1 %vm371_vm0, %v521_v41  ;;  %v1245_v46 = vsel %vm2017_vm3, 0.0, %v2081_v40  ;;  %vm2170_vm12 = vcmp.eq.s32.totalorder %v439_v37, 0  ;;  %vm2208_vm15 = vcmp.eq.s32.totalorder %v439_v37, 7 }
  0xd3   : > { %1561 = vmatmul.msk.f32.gmra.mxu3 %vm371_vm0, %v699_v42  ;;  %1592 = vmatmul.msk.f32.gmra.mxu0 %vm371_vm0, %v1066_v43  ;;  %v351_v47 = vpop.f32.mrf.mxu0  ;;  %v972_v60 = vsel %vm2041_vm5, 0.0, %v2081_v40 }
  0xd4   : > { %v352_v48 = vadd.f32 %v2007_v50, %v351_v47  ;;  %v392_v47 = vadd.s32 56, %v1989_v30 }
  0xd6   : > { %v367_v53 = vmax.f32 %v352_v48, 0.0  ;;  %v446_v63 = vand.u32 7, %v392_v47 }
  0xd7   : > { %v2111_v54 = vld [vmem:[#allocation2 + $0x28] sm:$0xff] }
  0xd8   : > { %v2113_v55 = vld [vmem:[#allocation2 + $0x27] sm:$0xff]  ;;  %380 = vst.msk [vmem:[#allocation2 + $0x30] sm:$0xff] %vm371_vm0, %v367_v53  ;;  %1555 = vmatmul.msk.f32.gmra.mxu2 %vm371_vm0, %v2111_v54  ;;  %vm2204_vm14 = vcmp.eq.s32.totalorder %v446_v63, 0 }
  0xd9   : > { %v2115_v56 = vld [vmem:[#allocation2 + $0x21] sm:$0xff]  ;;  %v522_v57 = vsel %vm2102_vm8, 0.0, %v2113_v55  ;;  %v1067_v59 = vsel %vm2037_vm4, 0.0, %v2113_v55  ;;  %v794_v10 = vsel %vm2068_vm6, 0.0, %v2113_v55 }
  0xda   : > { %v700_v58 = vsel %vm2106_vm9, 0.0, %v2115_v56  ;;  %1547 = vmatmul.msk.f32.gmra.mxu1 %vm371_vm0, %v522_v57  ;;  %v1246_v2 = vsel %vm2041_vm5, 0.0, %v2115_v56 }
  0xdb   : > { %1562 = vmatmul.msk.f32.gmra.mxu3 %vm371_vm0, %v700_v58  ;;  %1593 = vmatmul.msk.f32.gmra.mxu0 %vm371_vm0, %v1067_v59  ;;  %v354_v6 = vpop.f32.mrf.mxu0 }
  0xdc   : > { %v355_v7 = vadd.f32 %v2007_v50, %v354_v6 }
  0xde   : > { %v368_v21 = vmax.f32 %v355_v7, 0.0 }
  0xdf   : > { %v2145_v22 = vld [vmem:[#allocation2 + $0x30] sm:$0xff] }
  0xe0   : > { %v2147_v23 = vld [vmem:[#allocation2 + $0x2f] sm:$0xff]  ;;  %381 = vst.msk [vmem:[#allocation2 + $0x38] sm:$0xff] %vm371_vm0, %v368_v21  ;;  %1556 = vmatmul.msk.f32.gmra.mxu2 %vm371_vm0, %v2145_v22 }
  0xe1   : > { %v2149_v24 = vld [vmem:[#allocation2 + $0x29] sm:$0xff]  ;;  %v523_v26 = vsel %vm2136_vm10, 0.0, %v2147_v23  ;;  %v1068_v32 = vsel %vm2068_vm6, 0.0, %v2147_v23 }
  0xe2   : > { %v701_v29 = vsel %vm2140_vm11, 0.0, %v2149_v24  ;;  %1548 = vmatmul.msk.f32.gmra.mxu1 %vm371_vm0, %v523_v26  ;;  %v1247_v41 = vsel %vm2072_vm7, 0.0, %v2149_v24 }
  0xe3   : > { %1563 = vmatmul.msk.f32.gmra.mxu3 %vm371_vm0, %v701_v29  ;;  %1594 = vmatmul.msk.f32.gmra.mxu0 %vm371_vm0, %v1068_v32  ;;  %v357_v42 = vpop.f32.mrf.mxu0 }
  0xe4   : > { %v358_v43 = vadd.f32 %v2007_v50, %v357_v42 }
  0xe6   : > { %v369_v48 = vmax.f32 %v358_v43, 0.0 }
  0xe7   : > { %v2179_v52 = vld [vmem:[#allocation2 + $0x38] sm:$0xff] }
  0xe8   : > { %v2181_v53 = vld [vmem:[#allocation2 + $0x37] sm:$0xff]  ;;  %382 = vst.msk [vmem:[#allocation2 + $0x40] sm:$0xff] %vm371_vm0, %v369_v48  ;;  %1557 = vmatmul.msk.f32.gmra.mxu2 %vm371_vm0, %v2179_v52 }
  0xe9   : > { %v2183_v57 = vld [vmem:[#allocation2 + $0x31] sm:$0xff]  ;;  %v524_v58 = vsel %vm2170_vm12, 0.0, %v2181_v53  ;;  %v1069_v59 = vsel %vm2102_vm8, 0.0, %v2181_v53  ;;  %v796_v55 = vsel %vm2136_vm10, 0.0, %v2181_v53 }
  0xea   : > { %v702_v30 = vsel %vm2174_vm13, 0.0, %v2183_v57  ;;  %1549 = vmatmul.msk.f32.gmra.mxu1 %vm371_vm0, %v524_v58  ;;  %v1248_v4 = vsel %vm2106_vm9, 0.0, %v2183_v57  ;;  %vm2232_vm9 = vcmp.eq.s32.totalorder %v446_v63, 7  ;;  %v791_v58 = vsel %vm1996_vm1, 0.0, %v2024_v1 }
  0xeb   : > { %1564 = vmatmul.msk.f32.gmra.mxu3 %vm371_vm0, %v702_v30  ;;  %1595 = vmatmul.msk.f32.gmra.mxu0 %vm371_vm0, %v1069_v59  ;;  %v360_v5 = vpop.f32.mrf.mxu0  ;;  %v1255_v59 = vld [vmem:[#allocation3 + $0x108] sm:$0xff]  ;;  %v971_v1 = vsel %vm2017_vm3, 0.0, %v2050_v20  ;;  %v793_v63 = vsel %vm2037_vm4, 0.0, %v2079_v39  ;;  %v973_v39 = vsel %vm2072_vm7, 0.0, %v2115_v56  ;;  %vm2572_vm1 = vnez %v2557_v51 }
  0xec   : > { %v361_v6 = vadd.f32 %v2007_v50, %v360_v5  ;;  %1296 = vmatpush.msra.mxu2 %v1255_v59  ;;  %v974_v34 = vsel %vm2572_vm1, 0.0, %v2149_v24  ;;  %v975_v49 = vsel %vm2140_vm11, 0.0, %v2183_v57 }
  0xee   : > { %v370_v13 = vmax.f32 %v361_v6, 0.0  ;;  %1297 = vmatpush.msra.mxu2 %v1254_v15  ;;  %v795_v6 = vsel %vm2102_vm8, 0.0, %v2147_v23 }
  0xef   : > { %v2212_v21 = vld [vmem:[#allocation2 + $0x40] sm:$0xff] }
  0xf0   : > { %v517_v26 = vld [vmem:[#allocation2 + $0x3f] sm:$0xff]  ;;  %383 = vst.msk [vmem:[#allocation2 + $0x48] sm:$0xff] %vm371_vm0, %v370_v13  ;;  %1558 = vmatmul.msk.f32.gmra.mxu2 %vm371_vm0, %v2212_v21 }
  0xf1   : > { %v2214_v29 = vld [vmem:[#allocation2 + $0x39] sm:$0xff]  ;;  %v525_v50 = vsel %vm2204_vm14, 0.0, %v517_v26  ;;  %v1070_v36 = vsel %vm2136_vm10, 0.0, %v517_v26  ;;  %v797_v23 = vsel %vm2170_vm12, 0.0, %v517_v26 }
  0xf2   : > { %v703_v32 = vsel %vm2208_vm15, 0.0, %v2214_v29  ;;  %1550 = vmatmul.msk.f32.gmra.mxu1 %vm371_vm0, %v525_v50  ;;  %v1249_v37 = vsel %vm2140_vm11, 0.0, %v2214_v29  ;;  %v976_v13 = vsel %vm2174_vm13, 0.0, %v2214_v29 }
  0xf3   : > { %1565 = vmatmul.msk.f32.gmra.mxu3 %vm371_vm0, %v703_v32  ;;  %1596 = vmatmul.msk.f32.gmra.mxu0 %vm371_vm0, %v1070_v36  ;;  %v2337_v32 = vld [vmem:[%s2532_s4] ss:$0 sm:$0xff] }
  0xf7   : > { %v2236_v43 = vld [vmem:[#allocation2 + $0x41] sm:$0xff]  ;;  %v1064_v20 = vld [vmem:[#allocation2 + $0x4f] sm:$0xff] }
  0xf8   : > { %v1063_v47 = vld [vmem:[#allocation2 + $0x47] sm:$0xff]  ;;  %1575 = vmatmul.msk.f32.vlgmr.msrb.gmra.mxu2 %vm371_vm0, %v2022_v0  ;;  %v704_v48 = vsel %vm2232_vm9, 0.0, %v2236_v43  ;;  %v1250_v0 = vsel %vm2174_vm13, 0.0, %v2236_v43  ;;  %v1072_v5 = vsel %vm2204_vm14, 0.0, %v1064_v20  ;;  %v977_v50 = vsel %vm2208_vm15, 0.0, %v2236_v43  ;;  %v1244_v43 = vld [vmem:[#allocation2 + $0x51] sm:$0xff] }
  0xf9   : > { %v1071_v30 = vsel %vm2170_vm12, 0.0, %v1063_v47  ;;  %v884_v9 = vld [vmem:[#allocation2 + $0x48] sm:$0xff]  ;;  %v798_v53 = vsel %vm2204_vm14, 0.0, %v1063_v47  ;;  %v1342_v47 = vld [vmem:[%s2533_s5 + $0x18] sm:$0xff]  ;;  %v1252_v59 = vsel %vm2232_vm9, 0.0, %v1244_v43 }
  0xfa   : > { %1567 = vmatmul.msk.f32.vlgmr.msrb.gmra.mxu1 %vm371_vm0, %v791_v58  ;;  %v970_v44 = vld [vmem:[#allocation2 + $0x49] sm:$0xff]  ;;  %1383 = vmatpush.msra.mxu3 %v1342_v47 }
  0xfb   : > { %1566 = vmatmul.msk.f32.gmra.mxu3 %vm371_vm0, %v704_v48  ;;  %1597 = vmatmul.msk.f32.gmra.mxu0 %vm371_vm0, %v1071_v30  ;;  %v978_v26 = vsel %vm2232_vm9, 0.0, %v970_v44  ;;  %v1251_v58 = vsel %vm2208_vm15, 0.0, %v970_v44 }
  0xfc   : > { %1384 = vmatpush.msra.mxu3 %v1341_v8 }
 0x100   : > { %1576 = vmatmul.msk.f32.gmra.mxu2 %vm371_vm0, %v2046_v14 }
 0x102   : > { %1568 = vmatmul.msk.f32.gmra.mxu1 %vm371_vm0, %v792_v33 }
 0x103   : > { %1583 = vmatmul.msk.f32.vlgmr.msrb.gmra.mxu3 %vm371_vm0, %v971_v1  ;;  %1598 = vmatmul.msk.f32.gmra.mxu0 %vm371_vm0, %v1072_v5  ;;  %v1340_v5 = vld [vmem:[%s2533_s5 + $0x8] sm:$0xff] }
 0x104   : > { %1385 = vmatpush.msra.mxu3 %v1340_v5 }
 0x108   : > { %1577 = vmatmul.msk.f32.gmra.mxu2 %vm371_vm0, %v2077_v38 }
 0x10a   : > { %1569 = vmatmul.msk.f32.gmra.mxu1 %vm371_vm0, %v793_v63 }
 0x10b   : > { %1584 = vmatmul.msk.f32.gmra.mxu3 %vm371_vm0, %v972_v60 }
 0x110   : > { %1578 = vmatmul.msk.f32.gmra.mxu2 %vm371_vm0, %v2111_v54 }
 0x112   : > { %1570 = vmatmul.msk.f32.gmra.mxu1 %vm371_vm0, %v794_v10 }
 0x113   : > { %1585 = vmatmul.msk.f32.gmra.mxu3 %vm371_vm0, %v973_v39 }
 0x118   : > { %1579 = vmatmul.msk.f32.gmra.mxu2 %vm371_vm0, %v2145_v22 }
 0x11a   : > { %1571 = vmatmul.msk.f32.gmra.mxu1 %vm371_vm0, %v795_v6 }
 0x11b   : > { %1586 = vmatmul.msk.f32.gmra.mxu3 %vm371_vm0, %v974_v34 }
 0x120   : > { %1580 = vmatmul.msk.f32.gmra.mxu2 %vm371_vm0, %v2179_v52 }
 0x122   : > { %1572 = vmatmul.msk.f32.gmra.mxu1 %vm371_vm0, %v796_v55  ;;  %v571_v55 = vpop.f32.mrf.mxu0 }
 0x123   : > { %1587 = vmatmul.msk.f32.gmra.mxu3 %vm371_vm0, %v975_v49 }
 0x128   : > { %1581 = vmatmul.msk.f32.gmra.mxu2 %vm371_vm0, %v2212_v21 }
 0x12a   : > { %1573 = vmatmul.msk.f32.gmra.mxu1 %vm371_vm0, %v797_v23 }
 0x12b   : > { %1588 = vmatmul.msk.f32.gmra.mxu3 %vm371_vm0, %v976_v13  ;;  %v1339_v13 = vld [vmem:[%s2533_s5] sm:$0xff] }
 0x12c   : > { %1386 = vmatpush.msra.mxu3 %v1339_v13 }
 0x130   : > { %1582 = vmatmul.msk.f32.gmra.mxu2 %vm371_vm0, %v884_v9 }
 0x132   : > { %1574 = vmatmul.msk.f32.gmra.mxu1 %vm371_vm0, %v798_v53 }
 0x133   : > { %1589 = vmatmul.msk.f32.gmra.mxu3 %vm371_vm0, %v977_v50  ;;  %v657_v50 = vpop.f32.mrf.mxu0 }
 0x138   : > { %1607 = vmatmul.msk.f32.vlgmr.msra.gmra.mxu2 %vm371_vm0, %v1245_v46 }
 0x13a   : > { %1599 = vmatmul.msk.f32.vlgmr.msra.gmra.mxu1 %vm371_vm0, %v2046_v14 }
 0x13b   : > { %1590 = vmatmul.msk.f32.gmra.mxu3 %vm371_vm0, %v978_v26 }
 0x13f   : > { %v574_v7 = vpop.f32.mrf.mxu1 }
 0x140   : > { %1608 = vmatmul.msk.f32.gmra.mxu2 %vm371_vm0, %v1246_v2  ;;  %v596_v61 = vadd.f32 %v2337_v32, %v574_v7 }
 0x142   : > { %1600 = vmatmul.msk.f32.gmra.mxu1 %vm371_vm0, %v2077_v38 }
 0x143   : > { %v660_v40 = vpop.f32.mrf.mxu2 }
 0x144   : > { %v2347_v46 = vadd.f32 %v660_v40, %v596_v61  ;;  %v751_v61 = vpop.f32.mrf.mxu0 }
 0x147   : > { %v577_v14 = vpop.f32.mrf.mxu1 }
 0x148   : > { %1609 = vmatmul.msk.f32.gmra.mxu2 %vm371_vm0, %v1247_v41  ;;  %v597_v11 = vadd.f32 %v2337_v32, %v577_v14 }
 0x14a   : > { %1601 = vmatmul.msk.f32.gmra.mxu1 %vm371_vm0, %v2111_v54 }
 0x14b   : > { %v663_v56 = vpop.f32.mrf.mxu2 }
 0x14c   : > { %v2357_v2 = vadd.f32 %v663_v56, %v597_v11  ;;  %v595_v11 = vadd.f32 %v2337_v32, %v571_v55 }
 0x14f   : > { %v580_v38 = vpop.f32.mrf.mxu1 }
 0x150   : > { %1610 = vmatmul.msk.f32.gmra.mxu2 %vm371_vm0, %v1248_v4  ;;  %v598_v35 = vadd.f32 %v2337_v32, %v580_v38  ;;  %v681_v38 = vadd.f32 %v657_v50, %v595_v11 }
 0x152   : > { %1602 = vmatmul.msk.f32.gmra.mxu1 %vm371_vm0, %v2145_v22  ;;  %v2379_v22 = vpop.f32.mrf.mxu3 }
 0x153   : > { %v666_v24 = vpop.f32.mrf.mxu2 }
 0x154   : > { %v2367_v41 = vadd.f32 %v666_v24, %v598_v35  ;;  %v1119_v35 = vpop.f32.mrf.mxu0 }
 0x157   : > { %v583_v54 = vpop.f32.mrf.mxu1 }
 0x158   : > { %1611 = vmatmul.msk.f32.gmra.mxu2 %vm371_vm0, %v1249_v37  ;;  %v599_v51 = vadd.f32 %v2337_v32, %v583_v54 }
 0x15a   : > { %1603 = vmatmul.msk.f32.gmra.mxu1 %vm371_vm0, %v2179_v52  ;;  %v2394_v48 = vpop.f32.mrf.mxu3 }
 0x15b   : > { %v669_v57 = vpop.f32.mrf.mxu2 }
 0x15c   : > { %v2377_v4 = vadd.f32 %v669_v57, %v599_v51  ;;  %v775_v51 = vadd.f32 %v751_v61, %v681_v38 }
 0x15f   : > { %v586_v36 = vpop.f32.mrf.mxu1 }
 0x160   : > { %1612 = vmatmul.msk.f32.gmra.mxu2 %vm371_vm0, %v1250_v0  ;;  %v600_v12 = vadd.f32 %v2337_v32, %v586_v36  ;;  %v1158_v0 = vld [vmem:[#allocation2 + $0x50] sm:$0xff] }
 0x162   : > { %1604 = vmatmul.msk.f32.gmra.mxu1 %vm371_vm0, %v2212_v21  ;;  %v2409_v33 = vpop.f32.mrf.mxu3 }
 0x163   : > { %v672_v52 = vpop.f32.mrf.mxu2 }
 0x164   : > { %v2392_v29 = vadd.f32 %v672_v52, %v600_v12 }
 0x167   : > { %v589_v37 = vpop.f32.mrf.mxu1 }
 0x168   : > { %1613 = vmatmul.msk.f32.gmra.mxu2 %vm371_vm0, %v1251_v58  ;;  %v601_v45 = vadd.f32 %v2337_v32, %v589_v37  ;;  %v1122_v37 = vpop.f32.mrf.mxu0  ;;  %v776_v58 = vadd.f32 %v2379_v22, %v2347_v46 }
 0x16a   : > { %1605 = vmatmul.msk.f32.gmra.mxu1 %vm371_vm0, %v884_v9  ;;  %v2415_v15 = vpop.f32.mrf.mxu3 }
 0x16b   : > { %v675_v30 = vpop.f32.mrf.mxu2 }
 0x16c   : > { %v2401_v21 = vadd.f32 %v675_v30, %v601_v45 }
 0x16f   : > { %v592_v62 = vpop.f32.mrf.mxu1 }
 0x170   : > { %1614 = vmatmul.msk.f32.gmra.mxu2 %vm371_vm0, %v1252_v59  ;;  %v602_v1 = vadd.f32 %v2337_v32, %v592_v62  ;;  %v1125_v5 = vpop.f32.mrf.mxu0 }
 0x172   : > { %1606 = vmatmul.msk.f32.gmra.mxu1 %vm371_vm0, %v1158_v0  ;;  %v2420_v39 = vpop.f32.mrf.mxu3 }
 0x173   : > { %v678_v63 = vpop.f32.mrf.mxu2 }
 0x174   : > { %v2413_v60 = vadd.f32 %v678_v63, %v602_v1  ;;  %v777_v63 = vadd.f32 %v2394_v48, %v2357_v2 }
 0x177   : > { %v845_v42 = vpop.f32.mrf.mxu1 }
 0x178   : > { %v869_v36 = vadd.f32 %v845_v42, %v775_v51  ;;  %v1128_v48 = vpop.f32.mrf.mxu0 }
 0x17a   : > { %v2422_v23 = vpop.f32.mrf.mxu3 }
 0x17b   : > { %v931_v20 = vpop.f32.mrf.mxu2 }
 0x17c   : > { %v955_v47 = vadd.f32 %v931_v20, %v869_v36 }
 0x17f   : > { %v848_v3 = vpop.f32.mrf.mxu1 }
 0x180   : > { %v870_v43 = vadd.f32 %v848_v3, %v776_v58 }
 0x182   : > { %v2427_v44 = vpop.f32.mrf.mxu3 }
 0x183   : > { %v934_v10 = vpop.f32.mrf.mxu2 }
 0x184   : > { %v956_v59 = vadd.f32 %v934_v10, %v870_v43 }
 0x187   : > { %v851_v6 = vpop.f32.mrf.mxu1 }
 0x188   : > { %v871_v55 = vadd.f32 %v851_v6, %v777_v63 }
 0x18a   : > { %v1025_v40 = vpop.f32.mrf.mxu3 }
 0x18b   : > { %v937_v34 = vpop.f32.mrf.mxu2  ;;  %v1049_v52 = vadd.f32 %v1025_v40, %v955_v47  ;;  %v778_v40 = vadd.f32 %v2409_v33, %v2367_v41 }
 0x18c   : > { %v957_v22 = vadd.f32 %v937_v34, %v871_v55 }
 0x18d   : > { %v1143_v30 = vadd.f32 %v1119_v35, %v1049_v52  ;;  %v779_v52 = vadd.f32 %v2415_v15, %v2377_v4 }
 0x18f   : > { %v854_v49 = vpop.f32.mrf.mxu1 }
 0x190   : > { %v872_v35 = vadd.f32 %v854_v49, %v778_v40 }
 0x192   : > { %v1028_v54 = vpop.f32.mrf.mxu3 }
 0x193   : > { %v940_v9 = vpop.f32.mrf.mxu2  ;;  %v1050_v8 = vadd.f32 %v1028_v54, %v956_v59 }
 0x194   : > { %v958_v6 = vadd.f32 %v940_v9, %v872_v35 }
 0x195   : > { %v1144_v13 = vadd.f32 %v1122_v37, %v1050_v8 }
 0x197   : > { %v857_v53 = vpop.f32.mrf.mxu1 }
 0x19a   : > { %v1031_v45 = vpop.f32.mrf.mxu3 }
 0x19b   : > { %v943_v26 = vpop.f32.mrf.mxu2  ;;  %v1051_v61 = vadd.f32 %v1031_v45, %v957_v22  ;;  %v1131_v45 = vpop.f32.mrf.mxu0 }
 0x19d   : > { %v1145_v2 = vadd.f32 %v1125_v5, %v1051_v61  ;;  %v781_v5 = vadd.f32 %v2422_v23, %v2401_v21  ;;  %v782_v61 = vadd.f32 %v2427_v44, %v2413_v60 }
 0x19f   : > { %v2429_v7 = vpop.f32.mrf.mxu1 }
 0x1a2   : > { %v1034_v46 = vpop.f32.mrf.mxu3 }
 0x1a3   : > { %v2431_v14 = vpop.f32.mrf.mxu2  ;;  %v1052_v47 = vadd.f32 %v1034_v46, %v958_v6 }
 0x1a5   : > { %v1146_v41 = vadd.f32 %v1128_v48, %v1052_v47 }
 0x1a7   : > { %v2434_v56 = vpop.f32.mrf.mxu1 }
 0x1aa   : > { %v1037_v51 = vpop.f32.mrf.mxu3 }
 0x1ab   : > { %v2436_v24 = vpop.f32.mrf.mxu2 }
 0x1af   : > { %v2438_v57 = vpop.f32.mrf.mxu1 }
 0x1b0   : > { %v876_v23 = vadd.f32 %v2438_v57, %v782_v61 }
 0x1b2   : > { %v1040_v59 = vpop.f32.mrf.mxu3 }
 0x1b3   : > { %v2440_v12 = vpop.f32.mrf.mxu2 }
 0x1b7   : > { %v1205_v32 = vpop.f32.mrf.mxu1 }
 0x1b8   : > { %v1229_v62 = vadd.f32 %v1205_v32, %v1143_v30  ;;  %v873_v32 = vadd.f32 %v857_v53, %v779_v52 }
 0x1ba   : > { %v959_v33 = vadd.f32 %v943_v26, %v873_v32 }
 0x1bb   : > { %v1299_v0 = vpop.f32.mrf.mxu2 }
 0x1bc   : > { %v1323_v1 = vadd.f32 %v1299_v0, %v1229_v62  ;;  %v1053_v30 = vadd.f32 %v1037_v51, %v959_v33  ;;  %v780_v62 = vadd.f32 %v2420_v39, %v2392_v29  ;;  %v1043_v29 = vpop.f32.mrf.mxu3  ;;  %v875_v39 = vadd.f32 %v2434_v56, %v781_v5 }
 0x1be   : > { %v1331_v42 = vmax.f32 %v1323_v1, 0.0  ;;  %v874_v4 = vadd.f32 %v2429_v7, %v780_v62  ;;  %v1147_v15 = vadd.f32 %v1131_v45, %v1053_v30  ;;  %v961_v7 = vadd.f32 %v2436_v24, %v875_v39 }
 0x1bf   : > { %v1208_v20 = vpop.f32.mrf.mxu1 }
 0x1c0   : > { %1615 = vmatmul.msk.f32.vlgmr.msra.gmra.mxu3 %vm371_vm0, %v1331_v42  ;;  %v1230_v50 = vadd.f32 %v1208_v20, %v1144_v13  ;;  %v960_v53 = vadd.f32 %v2431_v14, %v874_v4  ;;  %v1134_v20 = vpop.f32.mrf.mxu0 }
 0x1c2   : > { %v1054_v63 = vadd.f32 %v1040_v59, %v960_v53 }
 0x1c3   : > { %v1302_v3 = vpop.f32.mrf.mxu2 }
 0x1c4   : > { %v1324_v10 = vadd.f32 %v1302_v3, %v1230_v50  ;;  %v1148_v46 = vadd.f32 %v1134_v20, %v1054_v63  ;;  %v1055_v50 = vadd.f32 %v1043_v29, %v961_v7  ;;  %v1046_v56 = vpop.f32.mrf.mxu3 }
 0x1c6   : > { %v1332_v11 = vmax.f32 %v1324_v10, 0.0 }
 0x1c7   : > { %v1211_v38 = vpop.f32.mrf.mxu1 }
 0x1c8   : > { %1616 = vmatmul.msk.f32.gmra.mxu3 %vm371_vm0, %v1332_v11  ;;  %v1231_v54 = vadd.f32 %v1211_v38, %v1145_v2  ;;  %v1137_v21 = vpop.f32.mrf.mxu0  ;;  %v962_v38 = vadd.f32 %v2440_v12, %v876_v23  ;;  %v1699_v12 = vld [vmem:[%s2534_s6] ss:$0 sm:$0xff] }
 0x1c9   : > { %v1149_v11 = vadd.f32 %v1137_v21, %v1055_v50 }
 0x1ca   : > { %v1056_v2 = vadd.f32 %v1046_v56, %v962_v38 }
 0x1cb   : > { %v1305_v36 = vpop.f32.mrf.mxu2 }
 0x1cc   : > { %v1325_v34 = vadd.f32 %v1305_v36, %v1231_v54 }
 0x1ce   : > { %v1333_v37 = vmax.f32 %v1325_v34, 0.0 }
 0x1cf   : > { %v1214_v58 = vpop.f32.mrf.mxu1 }
 0x1d0   : > { %1617 = vmatmul.msk.f32.gmra.mxu3 %vm371_vm0, %v1333_v37  ;;  %v1232_v49 = vadd.f32 %v1214_v58, %v1146_v41  ;;  %v1140_v54 = vpop.f32.mrf.mxu0 }
 0x1d1   : > { %v1150_v44 = vadd.f32 %v1140_v54, %v1056_v2 }
 0x1d3   : > { %v1308_v43 = vpop.f32.mrf.mxu2 }
 0x1d4   : > { %v1326_v9 = vadd.f32 %v1308_v43, %v1232_v49 }
 0x1d6   : > { %v1334_v0 = vmax.f32 %v1326_v9, 0.0 }
 0x1d7   : > { %v1217_v8 = vpop.f32.mrf.mxu1 }
 0x1d8   : > { %1618 = vmatmul.msk.f32.gmra.mxu3 %vm371_vm0, %v1334_v0  ;;  %v1233_v1 = vadd.f32 %v1217_v8, %v1147_v15 }
 0x1db   : > { %v1311_v26 = vpop.f32.mrf.mxu2 }
 0x1dc   : > { %v1327_v42 = vadd.f32 %v1311_v26, %v1233_v1 }
 0x1de   : > { %v1335_v55 = vmax.f32 %v1327_v42, 0.0 }
 0x1df   : > { %v1220_v13 = vpop.f32.mrf.mxu1 }
 0x1e0   : > { %1619 = vmatmul.msk.f32.gmra.mxu3 %vm371_vm0, %v1335_v55  ;;  %v1234_v22 = vadd.f32 %v1220_v13, %v1148_v46 }
 0x1e3   : > { %v1314_v14 = vpop.f32.mrf.mxu2 }
 0x1e4   : > { %v1328_v3 = vadd.f32 %v1314_v14, %v1234_v22 }
 0x1e6   : > { %v1336_v10 = vmax.f32 %v1328_v3, 0.0 }
 0x1e7   : > { %v1223_v40 = vpop.f32.mrf.mxu1 }
 0x1e8   : > { %1620 = vmatmul.msk.f32.gmra.mxu3 %vm371_vm0, %v1336_v10  ;;  %v1235_v24 = vadd.f32 %v1223_v40, %v1149_v11 }
 0x1eb   : > { %v1317_v35 = vpop.f32.mrf.mxu2 }
 0x1ec   : > { %v1329_v48 = vadd.f32 %v1317_v35, %v1235_v24 }
 0x1ee   : > { %v1337_v6 = vmax.f32 %v1329_v48, 0.0 }
 0x1ef   : > { %v1226_v60 = vpop.f32.mrf.mxu1 }
 0x1f0   : > { %1621 = vmatmul.msk.f32.gmra.mxu3 %vm371_vm0, %v1337_v6  ;;  %v1236_v51 = vadd.f32 %v1226_v60, %v1150_v44 }
 0x1f3   : > { %v1320_v57 = vpop.f32.mrf.mxu2 }
 0x1f4   : > { %v1330_v36 = vadd.f32 %v1320_v57, %v1236_v51 }
 0x1f6   : > { %v1338_v47 = vmax.f32 %v1330_v36, 0.0 }
 0x1f8   : > { %1622 = vmatmul.msk.f32.gmra.mxu3 %vm371_vm0, %v1338_v47 }
 0x243   : > { %v1388_v34 = vpop.f32.mrf.mxu3 }
 0x244   : > { %v1389_v52 = vadd.f32 %v1699_v12, %v1388_v34 }
 0x246   : > { %v1412_v37 = vmax.f32 %v1389_v52, 0.0 }
 0x248   : > { %v1420_v58 = vadd.f32 %v1412_v37, %v1958_v16 }
 0x24a   : > { %v1428_v32 = vmax.f32 %v1420_v58, 0.0 }
 0x24b   : > { %v1391_v41 = vpop.f32.mrf.mxu3 }
 0x24c   : > { %1436 = vst [vmem:[%s2477_s17] sm:$0xff] %v1428_v32  ;;  %v1392_v33 = vadd.f32 %v1699_v12, %v1391_v41 }
 0x24e   : > { %v1413_v49 = vmax.f32 %v1392_v33, 0.0 }
 0x250   : > { %v1421_v45 = vadd.f32 %v1413_v49, %v1962_v17 }
 0x252   : > { %v1429_v43 = vmax.f32 %v1421_v45, 0.0 }
 0x253   : > { %v1394_v30 = vpop.f32.mrf.mxu3 }
 0x254   : > { %1437 = vst [vmem:[%s2477_s17 + $0x8] sm:$0xff] %v1429_v43  ;;  %v1395_v9 = vadd.f32 %v1699_v12, %v1394_v30 }
 0x256   : > { %v1414_v59 = vmax.f32 %v1395_v9, 0.0 }
 0x258   : > { %v1422_v16 = vadd.f32 %v1414_v59, %v1966_v18 }
 0x25a   : > { %v1430_v62 = vmax.f32 %v1422_v16, 0.0 }
 0x25b   : > { %v1397_v0 = vpop.f32.mrf.mxu3 }
 0x25c   : > { %1438 = vst [vmem:[%s2477_s17 + $0x10] sm:$0xff] %v1430_v62  ;;  %v1398_v8 = vadd.f32 %v1699_v12, %v1397_v0 }
 0x25e   : > { %v1415_v4 = vmax.f32 %v1398_v8, 0.0 }
 0x260   : > { %v1423_v15 = vadd.f32 %v1415_v4, %v1970_v19 }
 0x262   : > { %v1431_v53 = vmax.f32 %v1423_v15, 0.0 }
 0x263   : > { %v1400_v1 = vpop.f32.mrf.mxu3 }
 0x264   : > { %1439 = vst [vmem:[%s2477_s17 + $0x18] sm:$0xff] %v1431_v53  ;;  %v1401_v17 = vadd.f32 %v1699_v12, %v1400_v1 }
 0x266   : > { %v1416_v26 = vmax.f32 %v1401_v17, 0.0 }
 0x268   : > { %v1424_v63 = vadd.f32 %v1416_v26, %v1978_v25 }
 0x26a   : > { %v1432_v42 = vmax.f32 %v1424_v63, 0.0 }
 0x26b   : > { %v1403_v20 = vpop.f32.mrf.mxu3 }
 0x26c   : > { %1440 = vst [vmem:[%s2477_s17 + $0x20] sm:$0xff] %v1432_v42  ;;  %v1404_v18 = vadd.f32 %v1699_v12, %v1403_v20 }
 0x26e   : > { %v1417_v5 = vmax.f32 %v1404_v18, 0.0 }
 0x270   : > { %v1425_v55 = vadd.f32 %v1417_v5, %v1982_v27 }
 0x272   : > { %v1433_v13 = vmax.f32 %v1425_v55, 0.0 }
 0x273   : > { %v1406_v29 = vpop.f32.mrf.mxu3 }
 0x274   : > { %1441 = vst [vmem:[%s2477_s17 + $0x28] sm:$0xff] %v1433_v13  ;;  %v1407_v19 = vadd.f32 %v1699_v12, %v1406_v29 }
 0x276   : > { %v1418_v39 = vmax.f32 %v1407_v19, 0.0 }
 0x278   : > { %v1426_v46 = vadd.f32 %v1418_v39, %v1986_v28 }
 0x27a   : > { %v1434_v25 = vmax.f32 %v1426_v46, 0.0 }
 0x27b   : > { %v1409_v7 = vpop.f32.mrf.mxu3 }
 0x27c   : > { %1442 = vst [vmem:[%s2477_s17 + $0x30] sm:$0xff] %v1434_v25  ;;  %v1410_v22 = vadd.f32 %v1699_v12, %v1409_v7 }
 0x27e   : > { %v1419_v27 = vmax.f32 %v1410_v22, 0.0 }
 0x280   : > { %v1427_v14 = vadd.f32 %v1419_v27, %v1992_v31 }
 0x282   : > { %v1435_v50 = vmax.f32 %v1427_v14, 0.0 }
 0x284   : > { %1443 = vst [vmem:[%s2477_s17 + $0x38] sm:$0xff] %v1435_v50 }
 0x285   : > { %1757 = shalt.err (!%p1754_p8)
}
 0x286   : > { %s1802_s15 = smov 128   ;;  %s1803_s17 = smov 8  }
 0x287   : > { %1646 = dma.vmem_to_hbm [thread:$0]  (%p1882_p5), %s1458_s22, 1024, %s1460_s23, %s1445_s28, %s1802_s15, %s1802_s15, %s1803_s17  }
 0x288 PF: > { %p1658_p9 = scmp.ge.s32.totalorder %s1796_s27, 2  ;;  %s1474_s19 = sand.u32 1, %s1784_s24  }
 0x289   : > { %s1475_s20 = scalar_lea.sflag [#allocation5], %s1474_s19 }
 0x28a   : > { %p1653_p10 = pnand %p1658_p9, %p1886_p6 }
 0x28c   : > { %p1654_p11 = pneg %p1653_p10 }
 0x28e   : > { %1779 = dma.done.wait (%p1654_p11), %s1475_s20, 1024  }
 0x28f   : > { %1781 = vsyncadd (%p1654_p11), %s1475_s20, 4294966272  ;;  %p18_p12 = scmp.ge.s32.totalorder %s1869_s30, 4   ;;  %s2573_s24 = smov %s1788_s25 }
 0x290   : > { %s2574_s25 = smov %s1792_s26  ;;  %s2575_s26 = smov %s1880_s10 }
 0x291   : > { %s2576_s27 = smov %s1869_s30  ;;  %20 = sbr.rel (!%p18_p12) target bundleno = 4 (0x4), region = 96 }
 0x296   :  { %1481 = vsyncpa [#allocation4], 1 }
 0x297   :  { %1483 = vsyncpa [#allocation4 + $0x1], 1 }
 0x298   :  { %1484 = vsyncpa [#allocation5], 1 }
 0x299   :  { %1486 = vsyncpa [#allocation5 + $0x1], 1 }

</bundles_post_ra>
